<compile_context>
chip_gen: v7x
topology: tpu7x:2x2x1
jax: 0.10.0
libtpu: 0.0.40
codegen_flags: <defaults>
</compile_context>

<pallas_src>
import functools
import math

import jax
import jax.numpy as jnp
from jax.experimental import pallas as pl
from jax.experimental.pallas import tpu as pltpu


# ---------------------------------------------------------------------------
# tiling helpers
# ---------------------------------------------------------------------------
def _round_up(x, m):
    return (x + m - 1) // m * m


def _pick_row_tile(m, cap=256):
    """Row (sublane) tile: multiple of 8, as large as possible up to `cap`."""
    if m <= cap:
        return _round_up(m, 8)
    return cap


def _pick_col_tile(n, cap=512):
    """Column (lane) tile: full N if small, else the largest multiple of 128
    <= cap that divides N (keeps stores lane-dense / unmasked)."""
    if n <= cap:
        return n
    for t in range(cap - cap % 128, 127, -128):
        if n % t == 0:
            return t
    return n


def _gelu_erf(x):
    # Exact BERT gelu: x * 0.5 * (1 + erf(x / sqrt(2)))  -- computed in f32.
    return x * 0.5 * (1.0 + jax.lax.erf(x / math.sqrt(2.0)))


# ---------------------------------------------------------------------------
# kernel 1: fused dense  ( x @ W + b , optional gelu )
# ---------------------------------------------------------------------------
def _dense_kernel(x_ref, w_ref, b_ref, o_ref, *, activation):
    acc = jnp.dot(x_ref[...], w_ref[...], preferred_element_type=jnp.float32)
    acc = acc + b_ref[...].astype(jnp.float32)
    if activation == "gelu":
        acc = _gelu_erf(acc)
    o_ref[...] = acc.astype(o_ref.dtype)


def dense(x2d, w, b, *, activation=None, tm_cap=256, tn_cap=512):
    """x2d: (M, K); w: (K, N) (transpose of torch nn.Linear.weight); b: (N,)."""
    M, K = x2d.shape
    N = w.shape[1]
    tm = _pick_row_tile(M, tm_cap)
    mp = _round_up(M, tm)
    tn = _pick_col_tile(N, tn_cap)
    if mp != M:
        x2d = jnp.pad(x2d, ((0, mp - M), (0, 0)))
    b2d = b.reshape(1, N)
    itemsize = x2d.dtype.itemsize

    kernel = functools.partial(_dense_kernel, activation=activation)
    out = pl.pallas_call(
        kernel,
        out_shape=jax.ShapeDtypeStruct((mp, N), x2d.dtype),
        grid_spec=pltpu.PrefetchScalarGridSpec(
            num_scalar_prefetch=0,
            # Outer axis walks weight-column tiles; inner axis streams row tiles.
            # The weight tile therefore stays VMEM-resident across the inner sweep.
            grid=(N // tn, mp // tm),
            in_specs=[
                pl.BlockSpec((tm, K), lambda j, i: (i, 0)),   # x: streams (inner)
                pl.BlockSpec((K, tn), lambda j, i: (0, j)),   # w: resident (outer)
                pl.BlockSpec((1, tn), lambda j, i: (0, j)),   # bias
            ],
            out_specs=pl.BlockSpec((tm, tn), lambda j, i: (i, j)),
        ),
        compiler_params=pltpu.CompilerParams(
            dimension_semantics=("parallel", "parallel")),
        cost_estimate=pl.CostEstimate(
            flops=2 * mp * K * N,
            transcendentals=(mp * N if activation == "gelu" else 0),
            bytes_accessed=(mp * K + K * N + N + mp * N) * itemsize),
    )(x2d, w, b2d)
    return out[:M]


# ---------------------------------------------------------------------------
# kernel 2: self-attention core (scores + mask + softmax + context)
# ---------------------------------------------------------------------------
def _attn_kernel(q_ref, k_ref, v_ref, mask_ref, o_ref, *, scale):
    q = q_ref[...].astype(jnp.float32)      # (S, D)
    k = k_ref[...].astype(jnp.float32)      # (S, D)
    v = v_ref[...]                          # (S, D)
    s = jnp.einsum("qd,kd->qk", q, k, preferred_element_type=jnp.float32)
    s = s * scale + mask_ref[...].astype(jnp.float32)   # (S,S) + (1,S) broadcast
    s = s - jnp.max(s, axis=-1, keepdims=True)
    p = jnp.exp(s)
    p = p / jnp.sum(p, axis=-1, keepdims=True)
    ctx = jnp.dot(p.astype(v.dtype), v, preferred_element_type=jnp.float32)
    o_ref[...] = ctx.astype(o_ref.dtype)


def attention_core(q, k, v, mask, *, scale):
    """q,k,v: (B, NH, S, D); mask: (B, 1, S) additive. Returns (B, NH, S, D)."""
    # TODO(synk): for long sequences this should be flash-tiled (online softmax);
    # here the full SxS score tile per (batch, head) lives in VMEM.
    B, NH, S, D = q.shape
    kernel = functools.partial(_attn_kernel, scale=scale)
    return pl.pallas_call(
        kernel,
        out_shape=jax.ShapeDtypeStruct((B, NH, S, D), q.dtype),
        grid_spec=pltpu.PrefetchScalarGridSpec(
            num_scalar_prefetch=0,
            grid=(B, NH),
            in_specs=[
                pl.BlockSpec((None, None, S, D), lambda b, h: (b, h, 0, 0)),
                pl.BlockSpec((None, None, S, D), lambda b, h: (b, h, 0, 0)),
                pl.BlockSpec((None, None, S, D), lambda b, h: (b, h, 0, 0)),
                pl.BlockSpec((None, 1, S), lambda b, h: (b, 0, 0)),
            ],
            out_specs=pl.BlockSpec((None, None, S, D), lambda b, h: (b, h, 0, 0)),
        ),
        compiler_params=pltpu.CompilerParams(
            dimension_semantics=("parallel", "parallel")),
    )(q, k, v, mask)


# ---------------------------------------------------------------------------
# kernel 3: fused residual add + LayerNorm
# ---------------------------------------------------------------------------
def _add_ln_kernel(x_ref, res_ref, g_ref, b_ref, o_ref, *, eps):
    x = x_ref[...].astype(jnp.float32) + res_ref[...].astype(jnp.float32)
    mu = jnp.mean(x, axis=-1, keepdims=True)
    var = jnp.mean(jnp.square(x - mu), axis=-1, keepdims=True)
    y = (x - mu) * jax.lax.rsqrt(var + eps)
    y = y * g_ref[...].astype(jnp.float32) + b_ref[...].astype(jnp.float32)
    o_ref[...] = y.astype(o_ref.dtype)


def add_layernorm(x2d, res2d, gamma, beta, *, eps, tm_cap=256):
    M, H = x2d.shape
    tm = _pick_row_tile(M, tm_cap)
    mp = _round_up(M, tm)
    if mp != M:
        x2d = jnp.pad(x2d, ((0, mp - M), (0, 0)))
        res2d = jnp.pad(res2d, ((0, mp - M), (0, 0)))
    g2d = gamma.reshape(1, H)
    b2d = beta.reshape(1, H)
    kernel = functools.partial(_add_ln_kernel, eps=eps)
    out = pl.pallas_call(
        kernel,
        out_shape=jax.ShapeDtypeStruct((mp, H), x2d.dtype),
        grid_spec=pltpu.PrefetchScalarGridSpec(
            num_scalar_prefetch=0,
            grid=(mp // tm,),
            in_specs=[
                pl.BlockSpec((tm, H), lambda i: (i, 0)),
                pl.BlockSpec((tm, H), lambda i: (i, 0)),
                pl.BlockSpec((1, H), lambda i: (0, 0)),
                pl.BlockSpec((1, H), lambda i: (0, 0)),
            ],
            out_specs=pl.BlockSpec((tm, H), lambda i: (i, 0)),
        ),
        compiler_params=pltpu.CompilerParams(dimension_semantics=("parallel",)),
    )(x2d, res2d, g2d, b2d)
    return out[:M]


# ---------------------------------------------------------------------------
# BertLayer / BertEncoder forward (wrappers composing the Pallas kernels)
# ---------------------------------------------------------------------------
def bert_layer(hidden, attn_mask, p, *, num_heads, eps):
    B, S, H = hidden.shape
    D = H // num_heads
    M = B * S
    x2d = hidden.reshape(M, H)

    q = dense(x2d, p["wq"], p["bq"])
    k = dense(x2d, p["wk"], p["bk"])
    v = dense(x2d, p["wv"], p["bv"])

    def split_heads(t):
        return t.reshape(B, S, num_heads, D).transpose(0, 2, 1, 3)

    ctx = attention_core(split_heads(q), split_heads(k), split_heads(v),
                         attn_mask, scale=1.0 / math.sqrt(D))
    ctx2d = ctx.transpose(0, 2, 1, 3).reshape(M, H)

    # BertSelfOutput: dense + residual + LayerNorm (dropout is an inference no-op)
    attn_out = dense(ctx2d, p["wo"], p["bo"])
    attn_out = add_layernorm(attn_out, x2d, p["ln1_g"], p["ln1_b"], eps=eps)

    # BertIntermediate (dense + gelu) and BertOutput (dense + residual + LayerNorm)
    inter = dense(attn_out, p["wi"], p["bi"], activation="gelu")
    out = dense(inter, p["wo2"], p["bo2"])
    out = add_layernorm(out, attn_out, p["ln2_g"], p["ln2_b"], eps=eps)
    return out.reshape(B, S, H)


def bert_encoder(hidden, attn_mask, layer_params, *, num_heads, eps):
    # TODO(synk): dropout layers are inference no-ops; head_mask is not supported.
    for p in layer_params:
        hidden = bert_layer(hidden, attn_mask, p, num_heads=num_heads, eps=eps)
    return hidden


# ---------------------------------------------------------------------------
# deterministic synthetic params + plain-JAX reference + self-test
# ---------------------------------------------------------------------------
def _init_layer_params(key, hidden, intermediate):
    ks = jax.random.split(key, 16)

    def lin(kw, kb, fan_in, fan_out):
        w = jax.random.normal(kw, (fan_in, fan_out), jnp.float32) / math.sqrt(fan_in)
        b = jax.random.normal(kb, (fan_out,), jnp.float32) * 0.1
        return w, b

    wq, bq = lin(ks[0], ks[1], hidden, hidden)
    wk, bk = lin(ks[2], ks[3], hidden, hidden)
    wv, bv = lin(ks[4], ks[5], hidden, hidden)
    wo, bo = lin(ks[6], ks[7], hidden, hidden)
    wi, bi = lin(ks[8], ks[9], hidden, intermediate)
    wo2, bo2 = lin(ks[10], ks[11], intermediate, hidden)
    ln1_g = 1.0 + 0.1 * jax.random.normal(ks[12], (hidden,), jnp.float32)
    ln1_b = 0.1 * jax.random.normal(ks[13], (hidden,), jnp.float32)
    ln2_g = 1.0 + 0.1 * jax.random.normal(ks[14], (hidden,), jnp.float32)
    ln2_b = 0.1 * jax.random.normal(ks[15], (hidden,), jnp.float32)
    return dict(wq=wq, bq=bq, wk=wk, bk=bk, wv=wv, bv=bv, wo=wo, bo=bo,
                wi=wi, bi=bi, wo2=wo2, bo2=bo2,
                ln1_g=ln1_g, ln1_b=ln1_b, ln2_g=ln2_g, ln2_b=ln2_b)


def _ref_layernorm(x, g, b, eps):
    mu = jnp.mean(x, axis=-1, keepdims=True)
    var = jnp.mean(jnp.square(x - mu), axis=-1, keepdims=True)
    return (x - mu) / jnp.sqrt(var + eps) * g + b


def _ref_encoder(hidden, attn_mask, layer_params, *, num_heads, eps):
    P = jax.lax.Precision.HIGHEST
    B, S, H = hidden.shape
    D = H // num_heads

    def lin(x, w, b):
        return jnp.matmul(x, w, precision=P) + b

    for p in layer_params:
        q = lin(hidden, p["wq"], p["bq"]).reshape(B, S, num_heads, D).transpose(0, 2, 1, 3)
        k = lin(hidden, p["wk"], p["bk"]).reshape(B, S, num_heads, D).transpose(0, 2, 1, 3)
        v = lin(hidden, p["wv"], p["bv"]).reshape(B, S, num_heads, D).transpose(0, 2, 1, 3)
        s = jnp.einsum("bhqd,bhkd->bhqk", q, k, precision=P) / math.sqrt(D)
        s = s + attn_mask[:, None, :, :]
        pr = jax.nn.softmax(s, axis=-1)
        ctx = jnp.einsum("bhqk,bhkd->bhqd", pr, v, precision=P)
        ctx = ctx.transpose(0, 2, 1, 3).reshape(B, S, H)
        attn = _ref_layernorm(lin(ctx, p["wo"], p["bo"]) + hidden,
                              p["ln1_g"], p["ln1_b"], eps)
        inter = lin(attn, p["wi"], p["bi"])
        inter = inter * 0.5 * (1.0 + jax.lax.erf(inter / math.sqrt(2.0)))
        hidden = _ref_layernorm(lin(inter, p["wo2"], p["bo2"]) + attn,
                                p["ln2_g"], p["ln2_b"], eps)
    return hidden


if __name__ == "__main__":
    # Small synthetic config: hidden=32, heads=2, intermediate=128, seq=8, batch=2, 2 layers
    B, S, H, I, NH, L = 2, 8, 32, 128, 2, 2
    EPS = 1e-12

    key = jax.random.PRNGKey(0)
    k_x, *k_layers = jax.random.split(key, L + 1)
    hidden = jax.random.normal(k_x, (B, S, H), dtype=jnp.float32)
    # Extended additive attention mask (0 = keep, -10000 = masked), shape (B, 1, S):
    # mask out the last two tokens of batch element 1.
    attn_mask = jnp.zeros((B, 1, S), jnp.float32).at[1, 0, S - 2:].set(-10000.0)
    layer_params = [_init_layer_params(k, H, I) for k in k_layers]

    @jax.jit
    def run(hidden, attn_mask, layer_params):
        return bert_encoder(hidden, attn_mask, layer_params, num_heads=NH, eps=EPS)

    out = run(hidden, attn_mask, layer_params)
    jax.block_until_ready(out)

    ref = _ref_encoder(hidden, attn_mask, layer_params, num_heads=NH, eps=EPS)
    assert out.shape == (B, S, H)
    assert bool(jnp.all(jnp.isfinite(out)))
    max_err = jnp.max(jnp.abs(out - ref))
    assert jnp.allclose(out, ref, atol=1e-2, rtol=1e-2), (
        f"mismatch vs reference, max abs err = {max_err}")
    print("KERNEL_OK")
</pallas_src>

<mosaic_0001>
module attributes {stable_mosaic.version = 11 : i64} {
  func.func @_dense_kernel(%arg0: i32, %arg1: i32, %arg2: memref<16x32xf32, #tpu.memory_space<vmem>>, %arg3: memref<32x32xf32, #tpu.memory_space<vmem>>, %arg4: memref<1x32xf32, #tpu.memory_space<vmem>>, %arg5: memref<16x32xf32, #tpu.memory_space<vmem>>) attributes {dimension_semantics = [#tpu.dimension_semantics<parallel>, #tpu.dimension_semantics<parallel>], iteration_bounds = array<i64: 1, 1>, scalar_prefetch = 0 : i64, scratch_operands = 0 : i64, tpu.core_type = #tpu.core_type<tc>, window_params = [{transform_indices = @transform_0, window_bounds = array<i64: 16, 32>}, {transform_indices = @transform_1, window_bounds = array<i64: 32, 32>}, {transform_indices = @transform_2, window_bounds = array<i64: 1, 32>}, {transform_indices = @transform_3, window_bounds = array<i64: 16, 32>}]} {
    %c0 = arith.constant 0 : index
    %c0_0 = arith.constant 0 : index
    %0 = vector.load %arg2[%c0, %c0_0] : memref<16x32xf32, #tpu.memory_space<vmem>>, vector<16x32xf32>
    %c0_1 = arith.constant 0 : index
    %c0_2 = arith.constant 0 : index
    %1 = vector.load %arg3[%c0_1, %c0_2] : memref<32x32xf32, #tpu.memory_space<vmem>>, vector<32x32xf32>
    %cst = arith.constant dense<0.000000e+00> : vector<16x32xf32>
    %2 = tpu.matmul %0, %1, %cst {dimension_numbers = #tpu.dot_dimension_numbers<[1], [0], [0], [1], [0, 0, 1, 1], [], []>} : vector<16x32xf32>, vector<32x32xf32>, vector<16x32xf32> -> vector<16x32xf32>
    %c0_3 = arith.constant 0 : index
    %c0_4 = arith.constant 0 : index
    %3 = vector.load %arg4[%c0_3, %c0_4] : memref<1x32xf32, #tpu.memory_space<vmem>>, vector<1x32xf32>
    %4 = vector.broadcast %3 : vector<1x32xf32> to vector<16x32xf32>
    %5 = arith.addf %2, %4 : vector<16x32xf32>
    %c0_5 = arith.constant 0 : index
    %c0_6 = arith.constant 0 : index
    %6 = vector.load %arg5[%c0_5, %c0_6] : memref<16x32xf32, #tpu.memory_space<vmem>>, vector<16x32xf32>
    tpu.vector_store %arg5[%c0_5, %c0_6], %5 {strides = array<i32>} : memref<16x32xf32, #tpu.memory_space<vmem>>, vector<16x32xf32>,
    return
  }
  func.func @transform_0(%arg0: i32, %arg1: i32) -> (i32, i32) {
    %c0_i32 = arith.constant 0 : i32
    %c0_i32_0 = arith.constant 0 : i32
    return %arg1, %c0_i32 : i32, i32
  }
  func.func @transform_1(%arg0: i32, %arg1: i32) -> (i32, i32) {
    %c0_i32 = arith.constant 0 : i32
    %c0_i32_0 = arith.constant 0 : i32
    return %c0_i32, %arg0 : i32, i32
  }
  func.func @transform_2(%arg0: i32, %arg1: i32) -> (i32, i32) {
    %c0_i32 = arith.constant 0 : i32
    %c0_i32_0 = arith.constant 0 : i32
    return %c0_i32, %arg0 : i32, i32
  }
  func.func @transform_3(%arg0: i32, %arg1: i32) -> (i32, i32) {
    %c0_i32 = arith.constant 0 : i32
    return %arg1, %arg0 : i32, i32
  }
}

module attributes {stable_mosaic.version = 11 : i64} {
  func.func @_attn_kernel(%arg0: i32, %arg1: i32, %arg2: memref<1x1x8x16xf32, #tpu.memory_space<vmem>>, %arg3: memref<1x1x8x16xf32, #tpu.memory_space<vmem>>, %arg4: memref<1x1x8x16xf32, #tpu.memory_space<vmem>>, %arg5: memref<1x1x8xf32, #tpu.memory_space<vmem>>, %arg6: memref<1x1x8x16xf32, #tpu.memory_space<vmem>>) attributes {dimension_semantics = [#tpu.dimension_semantics<parallel>, #tpu.dimension_semantics<parallel>], iteration_bounds = array<i64: 2, 2>, scalar_prefetch = 0 : i64, scratch_operands = 0 : i64, tpu.core_type = #tpu.core_type<tc>, window_params = [{transform_indices = @transform_0, window_bounds = array<i64: 1, 1, 8, 16>}, {transform_indices = @transform_1, window_bounds = array<i64: 1, 1, 8, 16>}, {transform_indices = @transform_2, window_bounds = array<i64: 1, 1, 8, 16>}, {transform_indices = @transform_3, window_bounds = array<i64: 1, 1, 8>}, {transform_indices = @transform_4, window_bounds = array<i64: 1, 1, 8, 16>}]} {
    %c0 = arith.constant 0 : index
    %c0_0 = arith.constant 0 : index
    %c0_1 = arith.constant 0 : index
    %c0_2 = arith.constant 0 : index
    %0 = vector.load %arg2[%c0, %c0_0, %c0_1, %c0_2] : memref<1x1x8x16xf32, #tpu.memory_space<vmem>>, vector<1x1x8x16xf32>
    %1 = vector.shape_cast %0 : vector<1x1x8x16xf32> to vector<8x16xf32>
    %c0_3 = arith.constant 0 : index
    %c0_4 = arith.constant 0 : index
    %c0_5 = arith.constant 0 : index
    %c0_6 = arith.constant 0 : index
    %2 = vector.load %arg3[%c0_3, %c0_4, %c0_5, %c0_6] : memref<1x1x8x16xf32, #tpu.memory_space<vmem>>, vector<1x1x8x16xf32>
    %3 = vector.shape_cast %2 : vector<1x1x8x16xf32> to vector<8x16xf32>
    %c0_7 = arith.constant 0 : index
    %c0_8 = arith.constant 0 : index
    %c0_9 = arith.constant 0 : index
    %c0_10 = arith.constant 0 : index
    %4 = vector.load %arg4[%c0_7, %c0_8, %c0_9, %c0_10] : memref<1x1x8x16xf32, #tpu.memory_space<vmem>>, vector<1x1x8x16xf32>
    %5 = vector.shape_cast %4 : vector<1x1x8x16xf32> to vector<8x16xf32>
    "tpu.trace_start"() <{level = 10 : i32, message = "qd,kd->qk"}> : () -> ()
    %cst = arith.constant dense<0.000000e+00> : vector<8x8xf32>
    %6 = tpu.matmul %1, %3, %cst {dimension_numbers = #tpu.dot_dimension_numbers<[1], [1], [0], [0], [0, 0, 1, 0], [], []>} : vector<8x16xf32>, vector<8x16xf32>, vector<8x8xf32> -> vector<8x8xf32>
    "tpu.trace_stop"() : () -> ()
    %cst_11 = arith.constant 2.500000e-01 : f32
    %7 = vector.broadcast %cst_11 : f32 to vector<8x8xf32>
    %8 = arith.mulf %6, %7 : vector<8x8xf32>
    %c0_12 = arith.constant 0 : index
    %c0_13 = arith.constant 0 : index
    %c0_14 = arith.constant 0 : index
    %9 = vector.load %arg5[%c0_12, %c0_13, %c0_14] : memref<1x1x8xf32, #tpu.memory_space<vmem>>, vector<1x1x8xf32>
    %10 = vector.shape_cast %9 : vector<1x1x8xf32> to vector<1x8xf32>
    %11 = vector.broadcast %10 : vector<1x8xf32> to vector<8x8xf32>
    %12 = arith.addf %8, %11 : vector<8x8xf32>
    %cst_15 = arith.constant dense<0xFF800000> : vector<8xf32>
    %13 = vector.multi_reduction <maximumf>, %12, %cst_15 [1] : vector<8x8xf32> to vector<8xf32>
    %14 = vector.shape_cast %13 : vector<8xf32> to vector<8x1xf32>
    %15 = vector.broadcast %14 : vector<8x1xf32> to vector<8x8xf32>
    %16 = arith.subf %12, %15 : vector<8x8xf32>
    %17 = math.exp %16 : vector<8x8xf32>
    %cst_16 = arith.constant dense<0.000000e+00> : vector<8xf32>
    %18 = vector.multi_reduction <add>, %17, %cst_16 [1] : vector<8x8xf32> to vector<8xf32>
    %19 = vector.shape_cast %18 : vector<8xf32> to vector<8x1xf32>
    %20 = vector.broadcast %19 : vector<8x1xf32> to vector<8x8xf32>
    %21 = arith.divf %17, %20 : vector<8x8xf32>
    %cst_17 = arith.constant dense<0.000000e+00> : vector<8x16xf32>
    %22 = tpu.matmul %21, %5, %cst_17 {dimension_numbers = #tpu.dot_dimension_numbers<[1], [0], [0], [1], [0, 0, 1, 1], [], []>} : vector<8x8xf32>, vector<8x16xf32>, vector<8x16xf32> -> vector<8x16xf32>
    %c0_18 = arith.constant 0 : index
    %c0_19 = arith.constant 0 : index
    %c0_20 = arith.constant 0 : index
    %c0_21 = arith.constant 0 : index
    %23 = vector.load %arg6[%c0_18, %c0_19, %c0_20, %c0_21] : memref<1x1x8x16xf32, #tpu.memory_space<vmem>>, vector<1x1x8x16xf32>
    %24 = vector.shape_cast %23 : vector<1x1x8x16xf32> to vector<8x16xf32>
    %25 = vector.shape_cast %22 : vector<8x16xf32> to vector<1x1x8x16xf32>
    tpu.vector_store %arg6[%c0_18, %c0_19, %c0_20, %c0_21], %25 {strides = array<i32>} : memref<1x1x8x16xf32, #tpu.memory_space<vmem>>, vector<1x1x8x16xf32>,
    return
  }
  func.func @transform_0(%arg0: i32, %arg1: i32) -> (i32, i32, i32, i32) {
    %c0_i32 = arith.constant 0 : i32
    %c0_i32_0 = arith.constant 0 : i32
    %c0_i32_1 = arith.constant 0 : i32
    return %arg0, %arg1, %c0_i32, %c0_i32_0 : i32, i32, i32, i32
  }
  func.func @transform_1(%arg0: i32, %arg1: i32) -> (i32, i32, i32, i32) {
    %c0_i32 = arith.constant 0 : i32
    %c0_i32_0 = arith.constant 0 : i32
    %c0_i32_1 = arith.constant 0 : i32
    return %arg0, %arg1, %c0_i32, %c0_i32_0 : i32, i32, i32, i32
  }
  func.func @transform_2(%arg0: i32, %arg1: i32) -> (i32, i32, i32, i32) {
    %c0_i32 = arith.constant 0 : i32
    %c0_i32_0 = arith.constant 0 : i32
    %c0_i32_1 = arith.constant 0 : i32
    return %arg0, %arg1, %c0_i32, %c0_i32_0 : i32, i32, i32, i32
  }
  func.func @transform_3(%arg0: i32, %arg1: i32) -> (i32, i32, i32) {
    %c0_i32 = arith.constant 0 : i32
    %c0_i32_0 = arith.constant 0 : i32
    %c0_i32_1 = arith.constant 0 : i32
    return %arg0, %c0_i32, %c0_i32_0 : i32, i32, i32
  }
  func.func @transform_4(%arg0: i32, %arg1: i32) -> (i32, i32, i32, i32) {
    %c0_i32 = arith.constant 0 : i32
    %c0_i32_0 = arith.constant 0 : i32
    %c0_i32_1 = arith.constant 0 : i32
    return %arg0, %arg1, %c0_i32, %c0_i32_0 : i32, i32, i32, i32
  }
}

module attributes {stable_mosaic.version = 11 : i64} {
  func.func @_add_ln_kernel(%arg0: i32, %arg1: memref<16x32xf32, #tpu.memory_space<vmem>>, %arg2: memref<16x32xf32, #tpu.memory_space<vmem>>, %arg3: memref<1x32xf32, #tpu.memory_space<vmem>>, %arg4: memref<1x32xf32, #tpu.memory_space<vmem>>, %arg5: memref<16x32xf32, #tpu.memory_space<vmem>>) attributes {dimension_semantics = [#tpu.dimension_semantics<parallel>], iteration_bounds = array<i64: 1>, scalar_prefetch = 0 : i64, scratch_operands = 0 : i64, tpu.core_type = #tpu.core_type<tc>, window_params = [{transform_indices = @transform_0, window_bounds = array<i64: 16, 32>}, {transform_indices = @transform_1, window_bounds = array<i64: 16, 32>}, {pipeline_mode = #tpu.pipeline_mode<synchronous>, transform_indices = @transform_2, window_bounds = array<i64: 1, 32>}, {pipeline_mode = #tpu.pipeline_mode<synchronous>, transform_indices = @transform_3, window_bounds = array<i64: 1, 32>}, {transform_indices = @transform_4, window_bounds = array<i64: 16, 32>}]} {
    %c0 = arith.constant 0 : index
    %c0_0 = arith.constant 0 : index
    %0 = vector.load %arg1[%c0, %c0_0] : memref<16x32xf32, #tpu.memory_space<vmem>>, vector<16x32xf32>
    %c0_1 = arith.constant 0 : index
    %c0_2 = arith.constant 0 : index
    %1 = vector.load %arg2[%c0_1, %c0_2] : memref<16x32xf32, #tpu.memory_space<vmem>>, vector<16x32xf32>
    %2 = arith.addf %0, %1 : vector<16x32xf32>
    %cst = arith.constant dense<0.000000e+00> : vector<16xf32>
    %3 = vector.multi_reduction <add>, %2, %cst [1] : vector<16x32xf32> to vector<16xf32>
    %4 = vector.shape_cast %3 : vector<16xf32> to vector<16x1xf32>
    %cst_3 = arith.constant 3.200000e+01 : f32
    %5 = vector.broadcast %cst_3 : f32 to vector<16x1xf32>
    %6 = arith.divf %4, %5 : vector<16x1xf32>
    %7 = vector.broadcast %6 : vector<16x1xf32> to vector<16x32xf32>
    %8 = arith.subf %2, %7 : vector<16x32xf32>
    %9 = arith.mulf %8, %8 : vector<16x32xf32>
    %cst_4 = arith.constant dense<0.000000e+00> : vector<16xf32>
    %10 = vector.multi_reduction <add>, %9, %cst_4 [1] : vector<16x32xf32> to vector<16xf32>
    %11 = vector.shape_cast %10 : vector<16xf32> to vector<16x1xf32>
    %cst_5 = arith.constant 3.200000e+01 : f32
    %12 = vector.broadcast %cst_5 : f32 to vector<16x1xf32>
    %13 = arith.divf %11, %12 : vector<16x1xf32>
    %14 = vector.broadcast %6 : vector<16x1xf32> to vector<16x32xf32>
    %15 = arith.subf %2, %14 : vector<16x32xf32>
    %cst_6 = arith.constant 9.99999996E-13 : f32
    %16 = vector.broadcast %cst_6 : f32 to vector<16x1xf32>
    %17 = arith.addf %13, %16 : vector<16x1xf32>
    %18 = math.rsqrt %17 : vector<16x1xf32>
    %19 = vector.broadcast %18 : vector<16x1xf32> to vector<16x32xf32>
    %20 = arith.mulf %15, %19 : vector<16x32xf32>
    %c0_7 = arith.constant 0 : index
    %c0_8 = arith.constant 0 : index
    %21 = vector.load %arg3[%c0_7, %c0_8] : memref<1x32xf32, #tpu.memory_space<vmem>>, vector<1x32xf32>
    %22 = vector.broadcast %21 : vector<1x32xf32> to vector<16x32xf32>
    %23 = arith.mulf %20, %22 : vector<16x32xf32>
    %c0_9 = arith.constant 0 : index
    %c0_10 = arith.constant 0 : index
    %24 = vector.load %arg4[%c0_9, %c0_10] : memref<1x32xf32, #tpu.memory_space<vmem>>, vector<1x32xf32>
    %25 = vector.broadcast %24 : vector<1x32xf32> to vector<16x32xf32>
    %26 = arith.addf %23, %25 : vector<16x32xf32>
    %c0_11 = arith.constant 0 : index
    %c0_12 = arith.constant 0 : index
    %27 = vector.load %arg5[%c0_11, %c0_12] : memref<16x32xf32, #tpu.memory_space<vmem>>, vector<16x32xf32>
    tpu.vector_store %arg5[%c0_11, %c0_12], %26 {strides = array<i32>} : memref<16x32xf32, #tpu.memory_space<vmem>>, vector<16x32xf32>,
    return
  }
  func.func @transform_0(%arg0: i32) -> (i32, i32) {
    %c0_i32 = arith.constant 0 : i32
    %c0_i32_0 = arith.constant 0 : i32
    return %arg0, %c0_i32 : i32, i32
  }
  func.func @transform_1(%arg0: i32) -> (i32, i32) {
    %c0_i32 = arith.constant 0 : i32
    %c0_i32_0 = arith.constant 0 : i32
    return %arg0, %c0_i32 : i32, i32
  }
  func.func @transform_2(%arg0: i32) -> (i32, i32) {
    %c0_i32 = arith.constant 0 : i32
    %c0_i32_0 = arith.constant 0 : i32
    %c0_i32_1 = arith.constant 0 : i32
    return %c0_i32, %c0_i32_0 : i32, i32
  }
  func.func @transform_3(%arg0: i32) -> (i32, i32) {
    %c0_i32 = arith.constant 0 : i32
    %c0_i32_0 = arith.constant 0 : i32
    %c0_i32_1 = arith.constant 0 : i32
    return %c0_i32, %c0_i32_0 : i32, i32
  }
  func.func @transform_4(%arg0: i32) -> (i32, i32) {
    %c0_i32 = arith.constant 0 : i32
    %c0_i32_0 = arith.constant 0 : i32
    return %arg0, %c0_i32 : i32, i32
  }
}

module attributes {stable_mosaic.version = 11 : i64} {
  func.func @_dense_kernel(%arg0: i32, %arg1: i32, %arg2: memref<16x32xf32, #tpu.memory_space<vmem>>, %arg3: memref<32x128xf32, #tpu.memory_space<vmem>>, %arg4: memref<1x128xf32, #tpu.memory_space<vmem>>, %arg5: memref<16x128xf32, #tpu.memory_space<vmem>>) attributes {dimension_semantics = [#tpu.dimension_semantics<parallel>, #tpu.dimension_semantics<parallel>], iteration_bounds = array<i64: 1, 1>, scalar_prefetch = 0 : i64, scratch_operands = 0 : i64, tpu.core_type = #tpu.core_type<tc>, window_params = [{transform_indices = @transform_0, window_bounds = array<i64: 16, 32>}, {transform_indices = @transform_1, window_bounds = array<i64: 32, 128>}, {transform_indices = @transform_2, window_bounds = array<i64: 1, 128>}, {transform_indices = @transform_3, window_bounds = array<i64: 16, 128>}]} {
    %c0 = arith.constant 0 : index
    %c0_0 = arith.constant 0 : index
    %0 = vector.load %arg2[%c0, %c0_0] : memref<16x32xf32, #tpu.memory_space<vmem>>, vector<16x32xf32>
    %c0_1 = arith.constant 0 : index
    %c0_2 = arith.constant 0 : index
    %1 = vector.load %arg3[%c0_1, %c0_2] : memref<32x128xf32, #tpu.memory_space<vmem>>, vector<32x128xf32>
    %cst = arith.constant dense<0.000000e+00> : vector<16x128xf32>
    %2 = tpu.matmul %0, %1, %cst {dimension_numbers = #tpu.dot_dimension_numbers<[1], [0], [0], [1], [0, 0, 1, 1], [], []>} : vector<16x32xf32>, vector<32x128xf32>, vector<16x128xf32> -> vector<16x128xf32>
    %c0_3 = arith.constant 0 : index
    %c0_4 = arith.constant 0 : index
    %3 = vector.load %arg4[%c0_3, %c0_4] : memref<1x128xf32, #tpu.memory_space<vmem>>, vector<1x128xf32>
    %4 = vector.broadcast %3 : vector<1x128xf32> to vector<16x128xf32>
    %5 = arith.addf %2, %4 : vector<16x128xf32>
    %cst_5 = arith.constant 5.000000e-01 : f32
    %6 = vector.broadcast %cst_5 : f32 to vector<16x128xf32>
    %7 = arith.mulf %5, %6 : vector<16x128xf32>
    %cst_6 = arith.constant 1.41421354 : f32
    %8 = vector.broadcast %cst_6 : f32 to vector<16x128xf32>
    %9 = arith.divf %5, %8 : vector<16x128xf32>
    %10 = math.erf %9 : vector<16x128xf32>
    %cst_7 = arith.constant 1.000000e+00 : f32
    %11 = vector.broadcast %cst_7 : f32 to vector<16x128xf32>
    %12 = arith.addf %11, %10 : vector<16x128xf32>
    %13 = arith.mulf %7, %12 : vector<16x128xf32>
    %c0_8 = arith.constant 0 : index
    %c0_9 = arith.constant 0 : index
    %14 = vector.load %arg5[%c0_8, %c0_9] : memref<16x128xf32, #tpu.memory_space<vmem>>, vector<16x128xf32>
    tpu.vector_store %arg5[%c0_8, %c0_9], %13 {strides = array<i32>} : memref<16x128xf32, #tpu.memory_space<vmem>>, vector<16x128xf32>,
    return
  }
  func.func @transform_0(%arg0: i32, %arg1: i32) -> (i32, i32) {
    %c0_i32 = arith.constant 0 : i32
    %c0_i32_0 = arith.constant 0 : i32
    return %arg1, %c0_i32 : i32, i32
  }
  func.func @transform_1(%arg0: i32, %arg1: i32) -> (i32, i32) {
    %c0_i32 = arith.constant 0 : i32
    %c0_i32_0 = arith.constant 0 : i32
    return %c0_i32, %arg0 : i32, i32
  }
  func.func @transform_2(%arg0: i32, %arg1: i32) -> (i32, i32) {
    %c0_i32 = arith.constant 0 : i32
    %c0_i32_0 = arith.constant 0 : i32
    return %c0_i32, %arg0 : i32, i32
  }
  func.func @transform_3(%arg0: i32, %arg1: i32) -> (i32, i32) {
    %c0_i32 = arith.constant 0 : i32
    return %arg1, %arg0 : i32, i32
  }
}

module attributes {stable_mosaic.version = 11 : i64} {
  func.func @_dense_kernel(%arg0: i32, %arg1: i32, %arg2: memref<16x128xf32, #tpu.memory_space<vmem>>, %arg3: memref<128x32xf32, #tpu.memory_space<vmem>>, %arg4: memref<1x32xf32, #tpu.memory_space<vmem>>, %arg5: memref<16x32xf32, #tpu.memory_space<vmem>>) attributes {dimension_semantics = [#tpu.dimension_semantics<parallel>, #tpu.dimension_semantics<parallel>], iteration_bounds = array<i64: 1, 1>, scalar_prefetch = 0 : i64, scratch_operands = 0 : i64, tpu.core_type = #tpu.core_type<tc>, window_params = [{transform_indices = @transform_0, window_bounds = array<i64: 16, 128>}, {transform_indices = @transform_1, window_bounds = array<i64: 128, 32>}, {transform_indices = @transform_2, window_bounds = array<i64: 1, 32>}, {transform_indices = @transform_3, window_bounds = array<i64: 16, 32>}]} {
    %c0 = arith.constant 0 : index
    %c0_0 = arith.constant 0 : index
    %0 = vector.load %arg2[%c0, %c0_0] : memref<16x128xf32, #tpu.memory_space<vmem>>, vector<16x128xf32>
    %c0_1 = arith.constant 0 : index
    %c0_2 = arith.constant 0 : index
    %1 = vector.load %arg3[%c0_1, %c0_2] : memref<128x32xf32, #tpu.memory_space<vmem>>, vector<128x32xf32>
    %cst = arith.constant dense<0.000000e+00> : vector<16x32xf32>
    %2 = tpu.matmul %0, %1, %cst {dimension_numbers = #tpu.dot_dimension_numbers<[1], [0], [0], [1], [0, 0, 1, 1], [], []>} : vector<16x128xf32>, vector<128x32xf32>, vector<16x32xf32> -> vector<16x32xf32>
    %c0_3 = arith.constant 0 : index
    %c0_4 = arith.constant 0 : index
    %3 = vector.load %arg4[%c0_3, %c0_4] : memref<1x32xf32, #tpu.memory_space<vmem>>, vector<1x32xf32>
    %4 = vector.broadcast %3 : vector<1x32xf32> to vector<16x32xf32>
    %5 = arith.addf %2, %4 : vector<16x32xf32>
    %c0_5 = arith.constant 0 : index
    %c0_6 = arith.constant 0 : index
    %6 = vector.load %arg5[%c0_5, %c0_6] : memref<16x32xf32, #tpu.memory_space<vmem>>, vector<16x32xf32>
    tpu.vector_store %arg5[%c0_5, %c0_6], %5 {strides = array<i32>} : memref<16x32xf32, #tpu.memory_space<vmem>>, vector<16x32xf32>,
    return
  }
  func.func @transform_0(%arg0: i32, %arg1: i32) -> (i32, i32) {
    %c0_i32 = arith.constant 0 : i32
    %c0_i32_0 = arith.constant 0 : i32
    return %arg1, %c0_i32 : i32, i32
  }
  func.func @transform_1(%arg0: i32, %arg1: i32) -> (i32, i32) {
    %c0_i32 = arith.constant 0 : i32
    %c0_i32_0 = arith.constant 0 : i32
    return %c0_i32, %arg0 : i32, i32
  }
  func.func @transform_2(%arg0: i32, %arg1: i32) -> (i32, i32) {
    %c0_i32 = arith.constant 0 : i32
    %c0_i32_0 = arith.constant 0 : i32
    return %c0_i32, %arg0 : i32, i32
  }
  func.func @transform_3(%arg0: i32, %arg1: i32) -> (i32, i32) {
    %c0_i32 = arith.constant 0 : i32
    return %arg1, %arg0 : i32, i32
  }
}

module attributes {stable_mosaic.version = 11 : i64} {
  func.func @_add_ln_kernel(%arg0: i32, %arg1: memref<16x32xf32, #tpu.memory_space<vmem>>, %arg2: memref<16x32xf32, #tpu.memory_space<vmem>>, %arg3: memref<1x32xf32, #tpu.memory_space<vmem>>, %arg4: memref<1x32xf32, #tpu.memory_space<vmem>>, %arg5: memref<16x32xf32, #tpu.memory_space<vmem>>) attributes {dimension_semantics = [#tpu.dimension_semantics<parallel>], iteration_bounds = array<i64: 1>, scalar_prefetch = 0 : i64, scratch_operands = 0 : i64, tpu.core_type = #tpu.core_type<tc>, window_params = [{transform_indices = @transform_0, window_bounds = array<i64: 16, 32>}, {transform_indices = @transform_1, window_bounds = array<i64: 16, 32>}, {pipeline_mode = #tpu.pipeline_mode<synchronous>, transform_indices = @transform_2, window_bounds = array<i64: 1, 32>}, {pipeline_mode = #tpu.pipeline_mode<synchronous>, transform_indices = @transform_3, window_bounds = array<i64: 1, 32>}, {transform_indices = @transform_4, window_bounds = array<i64: 16, 32>}]} {
    %c0 = arith.constant 0 : index
    %c0_0 = arith.constant 0 : index
    %0 = vector.load %arg1[%c0, %c0_0] : memref<16x32xf32, #tpu.memory_space<vmem>>, vector<16x32xf32>
    %c0_1 = arith.constant 0 : index
    %c0_2 = arith.constant 0 : index
    %1 = vector.load %arg2[%c0_1, %c0_2] : memref<16x32xf32, #tpu.memory_space<vmem>>, vector<16x32xf32>
    %2 = arith.addf %0, %1 : vector<16x32xf32>
    %cst = arith.constant dense<0.000000e+00> : vector<16xf32>
    %3 = vector.multi_reduction <add>, %2, %cst [1] : vector<16x32xf32> to vector<16xf32>
    %4 = vector.shape_cast %3 : vector<16xf32> to vector<16x1xf32>
    %cst_3 = arith.constant 3.200000e+01 : f32
    %5 = vector.broadcast %cst_3 : f32 to vector<16x1xf32>
    %6 = arith.divf %4, %5 : vector<16x1xf32>
    %7 = vector.broadcast %6 : vector<16x1xf32> to vector<16x32xf32>
    %8 = arith.subf %2, %7 : vector<16x32xf32>
    %9 = arith.mulf %8, %8 : vector<16x32xf32>
    %cst_4 = arith.constant dense<0.000000e+00> : vector<16xf32>
    %10 = vector.multi_reduction <add>, %9, %cst_4 [1] : vector<16x32xf32> to vector<16xf32>
    %11 = vector.shape_cast %10 : vector<16xf32> to vector<16x1xf32>
    %cst_5 = arith.constant 3.200000e+01 : f32
    %12 = vector.broadcast %cst_5 : f32 to vector<16x1xf32>
    %13 = arith.divf %11, %12 : vector<16x1xf32>
    %14 = vector.broadcast %6 : vector<16x1xf32> to vector<16x32xf32>
    %15 = arith.subf %2, %14 : vector<16x32xf32>
    %cst_6 = arith.constant 9.99999996E-13 : f32
    %16 = vector.broadcast %cst_6 : f32 to vector<16x1xf32>
    %17 = arith.addf %13, %16 : vector<16x1xf32>
    %18 = math.rsqrt %17 : vector<16x1xf32>
    %19 = vector.broadcast %18 : vector<16x1xf32> to vector<16x32xf32>
    %20 = arith.mulf %15, %19 : vector<16x32xf32>
    %c0_7 = arith.constant 0 : index
    %c0_8 = arith.constant 0 : index
    %21 = vector.load %arg3[%c0_7, %c0_8] : memref<1x32xf32, #tpu.memory_space<vmem>>, vector<1x32xf32>
    %22 = vector.broadcast %21 : vector<1x32xf32> to vector<16x32xf32>
    %23 = arith.mulf %20, %22 : vector<16x32xf32>
    %c0_9 = arith.constant 0 : index
    %c0_10 = arith.constant 0 : index
    %24 = vector.load %arg4[%c0_9, %c0_10] : memref<1x32xf32, #tpu.memory_space<vmem>>, vector<1x32xf32>
    %25 = vector.broadcast %24 : vector<1x32xf32> to vector<16x32xf32>
    %26 = arith.addf %23, %25 : vector<16x32xf32>
    %c0_11 = arith.constant 0 : index
    %c0_12 = arith.constant 0 : index
    %27 = vector.load %arg5[%c0_11, %c0_12] : memref<16x32xf32, #tpu.memory_space<vmem>>, vector<16x32xf32>
    tpu.vector_store %arg5[%c0_11, %c0_12], %26 {strides = array<i32>} : memref<16x32xf32, #tpu.memory_space<vmem>>, vector<16x32xf32>,
    return
  }
  func.func @transform_0(%arg0: i32) -> (i32, i32) {
    %c0_i32 = arith.constant 0 : i32
    %c0_i32_0 = arith.constant 0 : i32
    return %arg0, %c0_i32 : i32, i32
  }
  func.func @transform_1(%arg0: i32) -> (i32, i32) {
    %c0_i32 = arith.constant 0 : i32
    %c0_i32_0 = arith.constant 0 : i32
    return %arg0, %c0_i32 : i32, i32
  }
  func.func @transform_2(%arg0: i32) -> (i32, i32) {
    %c0_i32 = arith.constant 0 : i32
    %c0_i32_0 = arith.constant 0 : i32
    %c0_i32_1 = arith.constant 0 : i32
    return %c0_i32, %c0_i32_0 : i32, i32
  }
  func.func @transform_3(%arg0: i32) -> (i32, i32) {
    %c0_i32 = arith.constant 0 : i32
    %c0_i32_0 = arith.constant 0 : i32
    %c0_i32_1 = arith.constant 0 : i32
    return %c0_i32, %c0_i32_0 : i32, i32
  }
  func.func @transform_4(%arg0: i32) -> (i32, i32) {
    %c0_i32 = arith.constant 0 : i32
    %c0_i32_0 = arith.constant 0 : i32
    return %arg0, %c0_i32 : i32, i32
  }
}

</mosaic_0001>

<bundles_post_ra>
// kernel: run.21
= control target key start
LH: loop header
LB: loop body
LE: loop exit
PB: predicated region body
PF: predicated region fallthrough
CT: control target
= control target key end

     0   :  { %s757_s15 = smov 0   ;;  %s759_s16 = smov 0   ;;  %s829_s0 = inlined_call_operand.vmem [shape: f32[2,2,8,16], index: 0, kind: input, shape index: {}]   ;;  %s830_s1 = inlined_call_operand.vmem [shape: f32[2,2,8,16], index: 1, kind: input, shape index: {}]   ;;  %s831_s2 = inlined_call_operand.vmem [shape: f32[2,2,8,16], index: 2, kind: input, shape index: {}]   ;;  %s832_s3 = inlined_call_operand.vmem [shape: f32[2,1,8], index: 3, kind: input, shape index: {}]   ;;  %s833_s4 = inlined_call_operand.vmem [shape: f32[2,2,8,16], index: 4, kind: output, shape index: {}]  }
   0x1   :  { %s761_s17 = smov 0   ;;  %s763_s18 = smov 0  }
   0x2   :  { %s765_s19 = smov 0  }
   0x3 LB: > { %s23_s20 = sadd.s32 1, %s720_s17  ;;  %s26_s21 = sadd.s32 1, %s724_s18  ;;  %s728_s19 = sphi %s765_s19, %s14_s19   ;;  %s724_s18 = sphi %s763_s18, %s837_s18   ;;  %s720_s17 = sphi %s761_s17, %s836_s17   ;;  %s716_s16 = sphi %s759_s16, %s835_s16   ;;  %s712_s15 = sphi %s757_s15, %s834_s15  }
   0x4   : > { %p24_p0 = scmp.ge.s32.totalorder %s23_s20, 2  ;;  %p615_p1 = scmp.ge.s32.totalorder %s728_s19, 1 }
   0x5   : > { %p219_p2 = scmp.lt.s32.totalorder %s728_s19, 5 }
   0x6   : > { %s839_s20 = smov (%p24_p0, %s23_s20), 0  ;;  %s841_s21 = smov (!%p24_p0, %s26_s21), %s724_s18 }
   0x7   : > { %p220_p3 = pnand %p615_p1, %p219_p2  ;;  %p28_p4 = scmp.ge.s32.totalorder %s841_s21, 2 }
   0x8   : > { %p270_p5 = scmp.lt.s32.totalorder (!%p220_p3), %s716_s16, 1  ;;  %p272_p6 = scmp.lt.s32.totalorder (!%p220_p3), %s712_s15, 1  ;;  %v730_v0 = vmov (!%p220_p3), 0.0   ;;  %vm731_vm0 = vmmov (!%p220_p3), 0   ;;  %vm308_vm1 = vcmask (!%p220_p3), 130048   ;;  %vm394_vm2 = vcmask (!%p220_p3), 64512  }
   0x9   : > { %s843_s21 = smov (%p28_p4, %s841_s21), 0  ;;  %223 = sbr.rel (%p220_p3) target bundleno = 768 (0x300), region = 36 }
   0xa   : > { %634 = vmatprep.subr.mxu0 (!%p220_p3), %v730_v0  ;;  %636 = vmatprep.mubr.msk.f32.mxu0 (!%p220_p3), %vm731_vm0, %v730_v0 }
   0xb   : > { %639 = vmatprep.subr.mxu1 (!%p220_p3), %v730_v0  ;;  %641 = vmatprep.mubr.msk.f32.mxu1 (!%p220_p3), %vm731_vm0, %v730_v0 }
  0x10   : > { %s845_s16 = smov (!%p270_p5, %s716_s16), 1  ;;  %s847_s15 = smov (!%p272_p6, %s712_s15), 1 }
  0x11   : > { %s616_s22 = sshll.u32 %s845_s16, 1  ;;  %s296_s7 = scalar_lea.vmem %s832_s3, %s845_s16 }
  0x12   : > { %s275_s23 = sadd.s32 %s616_s22, %s847_s15  ;;  %v626_v4 = vld [vmem:[%s296_s7] ss:$0 sm:$0xff] }
  0x13   : > { %s787_s24 = sshll.u32 %s275_s23, 3 }
  0x14   : > { %s285_s27 = scalar_lea.vmem %s830_s1, %s787_s24  ;;  %s277_s30 = scalar_lea.vmem %s829_s0, %s787_s24 }
  0x15   : > { %v306_v1 = vld [vmem:[%s285_s27] sm:$0xff]  ;;  %s293_s10 = scalar_lea.vmem %s831_s2, %s787_s24  ;;  %s304_s13 = scalar_lea.vmem %s833_s4, %s787_s24 }
  0x16   : > { %635 = vmatpush3.xpose.msk.msra.mxu0 %vm308_vm1, %v306_v1  ;;  %v305_v2 = vld [vmem:[%s277_s30] sm:$0xff] }
  0x17   : > { %v307_v14 = vld [vmem:[%s293_s10] sm:$0xff] }
  0x18   : > { %640 = vmatpush3.msra.mxu1 %v307_v14 }
  0x19   : > { %637 = vmatmul.mubr.msk.f32.vlgmr.msra.gmra.mrb[0].mxu0 %vm308_vm1, %v305_v2 }
  0xec   : > { %v381_v3 = vpop.f32.mrb[0].mxu0 }
  0xed   : > { %v385_v5 = vmul.f32 0.25, %v381_v3  ;;  %v638_v6 = vpop.f32.mrb[1].mxu0 }
  0xef   : > { %v393_v7 = vadd.f32 %v626_v4, %v385_v5 }
  0xf1   : > { %v395_v8 = vsel %vm394_vm2, %v393_v7, -inf }
  0xf2   : > { %396 = vmax.xlane.f32.xlu0 %v395_v8 }
 0x17f   : > { %v397_v9 = vpop.xlane.xlu0 %396 }
 0x180   : > { %v398_v10 = vsub.f32 %v393_v7, %v397_v9 }
 0x182   : > { %v399_v11 = vmul.f32 1.442695, %v398_v10 }
 0x184   : > { %686 = vpow2.f32 %v399_v11 }
 0x18e   : > { %v687_v12 = vpop.eup %686 }
 0x18f   : > { %v401_v13 = vsel %vm394_vm2, %v687_v12, 0.0 }
 0x190   : > { %402 = vadd.xlane.f32.xlu0 %v401_v13 }
 0x21d   : > { %v403_v15 = vpop.xlane.xlu0 %402 }
 0x21e   : > { %688 = vrcp.f32 %v403_v15 }
 0x228   : > { %v689_v16 = vpop.eup %688 }
 0x229   : > { %v405_v17 = vmul.f32 %v689_v16, %v687_v12 }
 0x22b   : > { %642 = vmatmul.mubr.msk.f32.vlgmr.msra.gmra.mrb[0].mxu1 %vm394_vm2, %v405_v17 }
 0x2fe   : > { %v475_v18 = vpop.f32.mrb[0].mxu1 }
 0x2ff   : > { %479 = vst.msk [vmem:[%s304_s13] sm:$0xff] %vm308_vm1, %v475_v18  ;;  %v643_v19 = vpop.f32.mrb[1].mxu1 }
 0x300 PF: > { %s14_s19 = sadd.s32 1, %s728_s19   ;;  %s834_s15 = smov %s720_s17 }
 0x301   : > { %p11_p7 = scmp.ge.s32.totalorder %s14_s19, 6   ;;  %s835_s16 = smov %s724_s18 }
 0x302   : > { %s836_s17 = smov %s839_s20  ;;  %s837_s18 = smov %s843_s21 }
 0x303   :  { %13 = sbr.rel (!%p11_p7) target bundleno = 3 (0x3), region = 75 }

// kernel: run.23
= control target key start
LH: loop header
LB: loop body
LE: loop exit
PB: predicated region body
PF: predicated region fallthrough
CT: control target
= control target key end

     0   :  { %vm23_vm0 = vcmask 261120   ;;  %s136_s0 = inlined_call_operand.vmem [shape: f32[16,32], index: 0, kind: input, shape index: {}]   ;;  %s137_s1 = inlined_call_operand.vmem [shape: f32[16,32], index: 1, kind: input, shape index: {}]   ;;  %s138_s2 = inlined_call_operand.vmem [shape: f32[1,32], index: 2, kind: input, shape index: {}]   ;;  %s139_s3 = inlined_call_operand.vmem [shape: f32[1,32], index: 3, kind: input, shape index: {}]   ;;  %s140_s4 = inlined_call_operand.vmem [shape: f32[16,32], index: 4, kind: output, shape index: {}]  }
   0x1   :  { %v17_v0 = vld [vmem:[%s136_s0] sm:$0xff]  ;;  %v18_v2 = vld [vmem:[%s136_s0 + $0x8] sm:$0xff] }
   0x2   :  { %v19_v1 = vld [vmem:[%s137_s1] sm:$0xff]  ;;  %v20_v4 = vld [vmem:[%s137_s1 + $0x8] sm:$0xff] }
   0x3   :  { %v21_v3 = vadd.f32 %v19_v1, %v17_v0  ;;  %v22_v5 = vadd.f32 %v20_v4, %v18_v2  ;;  %v75_v25 = vld [vmem:[%s138_s2] ss:$0 sm:$0xff] }
   0x4   :  { %v76_v27 = vld [vmem:[%s139_s3] ss:$0 sm:$0xff] }
   0x5   :  { %v24_v6 = vsel %vm23_vm0, %v21_v3, 0.0  ;;  %v27_v7 = vsel %vm23_vm0, %v22_v5, 0.0 }
   0x6   :  { %25 = vadd.xlane.f32.xlu0 %v24_v6 }
   0xa   :  { %28 = vadd.xlane.f32.xlu0 %v27_v7 }
  0x93   :  { %v26_v8 = vpop.xlane.xlu0 %25 }
  0x94   :  { %v31_v9 = vmul.f32 0.03125, %v26_v8 }
  0x96   :  { %v33_v10 = vsub.f32 %v21_v3, %v31_v9 }
  0x97   :  { %v29_v11 = vpop.xlane.xlu0 %28 }
  0x98   :  { %v32_v12 = vmul.f32 0.03125, %v29_v11  ;;  %v35_v13 = vmul.f32 %v33_v10, %v33_v10 }
  0x9a   :  { %v34_v14 = vsub.f32 %v22_v5, %v32_v12  ;;  %v37_v15 = vsel %vm23_vm0, %v35_v13, 0.0 }
  0x9b   :  { %38 = vadd.xlane.f32.xlu1 %v37_v15 }
  0x9c   :  { %v36_v16 = vmul.f32 %v34_v14, %v34_v14 }
  0x9e   :  { %v40_v17 = vsel %vm23_vm0, %v36_v16, 0.0 }
  0x9f   :  { %41 = vadd.xlane.f32.xlu1 %v40_v17 }
 0x128   :  { %v39_v18 = vpop.xlane.xlu1 %38 }
 0x129   :  { %v43_v19 = vmul.f32 0.03125, %v39_v18 }
 0x12b   :  { %v45_v20 = vadd.f32 1e-12, %v43_v19 }
 0x12c   :  { %v42_v21 = vpop.xlane.xlu1 %41 }
 0x12d   :  { %77 = vrsqrt.f32 %v45_v20  ;;  %v44_v22 = vmul.f32 0.03125, %v42_v21 }
 0x12f   :  { %v46_v23 = vadd.f32 1e-12, %v44_v22 }
 0x131   :  { %79 = vrsqrt.f32 %v46_v23 }
 0x137   :  { %v78_v24 = vpop.eup %77 }
 0x138   :  { %v49_v26 = vmul.f32 %v78_v24, %v33_v10 }
 0x13a   :  { %v58_v28 = vmul.f32 %v75_v25, %v49_v26 }
 0x13b   :  { %v80_v29 = vpop.eup %79 }
 0x13c   :  { %v67_v30 = vadd.f32 %v76_v27, %v58_v28  ;;  %v50_v31 = vmul.f32 %v80_v29, %v34_v14 }
 0x13e   :  { %69 = vst.msk [vmem:[%s140_s4] sm:$0xff] %vm23_vm0, %v67_v30  ;;  %v59_v32 = vmul.f32 %v75_v25, %v50_v31 }
 0x140   :  { %v68_v33 = vadd.f32 %v76_v27, %v59_v32 }
 0x142   :  { %70 = vst.msk [vmem:[%s140_s4 + $0x8] sm:$0xff] %vm23_vm0, %v68_v33 }

// kernel: run.20
= control target key start
LH: loop header
LB: loop body
LE: loop exit
PB: predicated region body
PF: predicated region fallthrough
CT: control target
= control target key end

     0   :  { %vm27_vm0 = vcmask 261120   ;;  %s194_s1 = inlined_call_operand.vmem [shape: f32[32,32], index: 1, kind: input, shape index: {}]   ;;  %s195_s0 = inlined_call_operand.vmem [shape: f32[16,32], index: 0, kind: input, shape index: {}]   ;;  %s196_s2 = inlined_call_operand.vmem [shape: f32[1,32], index: 2, kind: input, shape index: {}]   ;;  %s197_s3 = inlined_call_operand.vmem [shape: f32[16,32], index: 3, kind: output, shape index: {}]  }
   0x1   :  { %v16_v0 = vld [vmem:[%s194_s1] sm:$0xff]  ;;  %v17_v1 = vld [vmem:[%s194_s1 + $0x8] sm:$0xff]  ;;  %v18_v2 = vld [vmem:[%s194_s1 + $0x10] sm:$0xff] }
   0x2   :  { %v135_v3 = vpack.c.bf16 %v17_v1, %v16_v0  ;;  %v19_v4 = vld [vmem:[%s194_s1 + $0x18] sm:$0xff]  ;;  %v14_v5 = vld [vmem:[%s195_s0] sm:$0xff]  ;;  %v15_v7 = vld [vmem:[%s195_s0 + $0x8] sm:$0xff] }
   0x3   :  { %v139_v6 = vpack.c.bf16 %v19_v4, %v18_v2  ;;  %132 = vmatprep.mubr.msk.f32.mxu0 %vm27_vm0, %v14_v5  ;;  %v115_v8 = vld [vmem:[%s196_s2] ss:$0 sm:$0xff] }
   0x4   :  { %136 = vmatprep.subr.bf16.mxu0 %v135_v3 }
   0x5   :  { %138 = vmatpush3.bf16.msra.mxu0 %v135_v3 }
   0x6   :  { %140 = vmatprep.subr.bf16.mxu0 %v139_v6 }
   0x9   :  { %142 = vmatpush3.bf16.msra.mxu0 %v139_v6 }
   0xc   :  { %133 = vmatmul.mubr.msk.f32.vlgmr.msra.gmra.mrb[0].mxu0 %vm27_vm0, %v15_v7 }
  0xdf   :  { %v134_v9 = vpop.f32.mrb[0].mxu0 }
  0xe0   :  { %v106_v10 = vadd.f32 %v134_v9, %v115_v8  ;;  %v100_v11 = vpop.f32.mrb[1].mxu0 }
  0xe1   :  { %v101_v12 = vadd.f32 %v115_v8, %v100_v11 }
  0xe2   :  { %110 = vst.msk [vmem:[%s197_s3 + $0x8] sm:$0xff] %vm27_vm0, %v106_v10 }
  0xe3   :  { %109 = vst.msk [vmem:[%s197_s3] sm:$0xff] %vm27_vm0, %v101_v12 }

// kernel: run.24
= control target key start
LH: loop header
LB: loop body
LE: loop exit
PB: predicated region body
PF: predicated region fallthrough
CT: control target
= control target key end

     0   :  { %vm27_vm0 = vcmask 261120   ;;  %s205_s1 = inlined_call_operand.vmem [shape: f32[32,128], index: 1, kind: input, shape index: {}]   ;;  %s206_s0 = inlined_call_operand.vmem [shape: f32[16,32], index: 0, kind: input, shape index: {}]   ;;  %s207_s2 = inlined_call_operand.vmem [shape: f32[1,128], index: 2, kind: input, shape index: {}]   ;;  %s208_s3 = inlined_call_operand.vmem [shape: f32[16,128], index: 3, kind: output, shape index: {}]  }
   0x1   :  { %v16_v0 = vld [vmem:[%s205_s1] sm:$0xff]  ;;  %v17_v1 = vld [vmem:[%s205_s1 + $0x8] sm:$0xff]  ;;  %v18_v2 = vld [vmem:[%s205_s1 + $0x10] sm:$0xff] }
   0x2   :  { %v146_v3 = vpack.c.bf16 %v17_v1, %v16_v0  ;;  %v19_v4 = vld [vmem:[%s205_s1 + $0x18] sm:$0xff]  ;;  %v14_v5 = vld [vmem:[%s206_s0] sm:$0xff]  ;;  %v15_v7 = vld [vmem:[%s206_s0 + $0x8] sm:$0xff] }
   0x3   :  { %v150_v6 = vpack.c.bf16 %v19_v4, %v18_v2  ;;  %143 = vmatprep.mubr.msk.f32.mxu0 %vm27_vm0, %v14_v5  ;;  %v126_v8 = vld [vmem:[%s207_s2] ss:$0 sm:$0xff] }
   0x4   :  { %147 = vmatprep.subr.bf16.mxu0 %v146_v3 }
   0x5   :  { %149 = vmatpush3.bf16.msra.mxu0 %v146_v3 }
   0x6   :  { %151 = vmatprep.subr.bf16.mxu0 %v150_v6 }
   0x9   :  { %153 = vmatpush3.bf16.msra.mxu0 %v150_v6 }
   0xc   :  { %144 = vmatmul.mubr.msk.f32.vlgmr.msra.gmra.mrb[0].mxu0 %vm27_vm0, %v15_v7 }
  0xdf   :  { %v145_v9 = vpop.f32.mrb[0].mxu0 }
  0xe0   :  { %v106_v10 = vadd.f32 %v145_v9, %v126_v8  ;;  %v100_v11 = vpop.f32.mrb[1].mxu0 }
  0xe1   :  { %v101_v12 = vadd.f32 %v126_v8, %v100_v11 }
  0xe2   :  { %v113_v13 = vmul.f32 0.70710677, %v106_v10  ;;  %v110_v17 = vmul.f32 0.5, %v106_v10 }
  0xe3   :  { %v112_v14 = vmul.f32 0.70710677, %v101_v12  ;;  %v109_v19 = vmul.f32 0.5, %v101_v12 }
  0xe4   :  { %154 = verf.f32 %v113_v13 }
  0xe5   :  { %156 = verf.f32 %v112_v14 }
  0xee   :  { %v155_v15 = vpop.eup %154 }
  0xef   :  { %v157_v16 = vpop.eup %156  ;;  %v117_v18 = vadd.f32 1.0, %v155_v15 }
  0xf0   :  { %v116_v20 = vadd.f32 1.0, %v157_v16 }
  0xf1   :  { %v119_v21 = vmul.f32 %v117_v18, %v110_v17 }
  0xf2   :  { %v118_v22 = vmul.f32 %v116_v20, %v109_v19 }
  0xf3   :  { %121 = vst [vmem:[%s208_s3 + $0x8] sm:$0xff] %v119_v21 }
  0xf4   :  { %120 = vst [vmem:[%s208_s3] sm:$0xff] %v118_v22 }

// kernel: run.25
= control target key start
LH: loop header
LB: loop body
LE: loop exit
PB: predicated region body
PF: predicated region fallthrough
CT: control target
= control target key end

     0   :  { %vm114_vm0 = vcmask 261120   ;;  %s290_s1 = inlined_call_operand.vmem [shape: f32[128,32], index: 1, kind: input, shape index: {}]   ;;  %s291_s0 = inlined_call_operand.vmem [shape: f32[16,128], index: 0, kind: input, shape index: {}]   ;;  %s292_s2 = inlined_call_operand.vmem [shape: f32[1,32], index: 2, kind: input, shape index: {}]   ;;  %s293_s3 = inlined_call_operand.vmem [shape: f32[16,32], index: 3, kind: output, shape index: {}]  }
   0x1   :  { %v16_v0 = vld [vmem:[%s290_s1] sm:$0xff]  ;;  %v17_v1 = vld [vmem:[%s290_s1 + $0x8] sm:$0xff]  ;;  %v18_v2 = vld [vmem:[%s290_s1 + $0x10] sm:$0xff] }
   0x2   :  { %v175_v3 = vpack.c.bf16 %v17_v1, %v16_v0  ;;  %v19_v4 = vld [vmem:[%s290_s1 + $0x18] sm:$0xff]  ;;  %v20_v6 = vld [vmem:[%s290_s1 + $0x20] sm:$0xff]  ;;  %v21_v7 = vld [vmem:[%s290_s1 + $0x28] sm:$0xff] }
   0x3   :  { %v179_v5 = vpack.c.bf16 %v19_v4, %v18_v2  ;;  %v183_v8 = vpack.c.bf16 %v21_v7, %v20_v6  ;;  %v14_v9 = vld [vmem:[%s291_s0] sm:$0xff]  ;;  %v22_v10 = vld [vmem:[%s290_s1 + $0x30] sm:$0xff]  ;;  %v23_v11 = vld [vmem:[%s290_s1 + $0x38] sm:$0xff] }
   0x4   :  { %176 = vmatprep.subr.bf16.mxu0 %v175_v3  ;;  %172 = vmatprep.mubr.f32.mxu0 %v14_v9  ;;  %v187_v12 = vpack.c.bf16 %v23_v11, %v22_v10  ;;  %v24_v13 = vld [vmem:[%s290_s1 + $0x40] sm:$0xff]  ;;  %v25_v14 = vld [vmem:[%s290_s1 + $0x48] sm:$0xff]  ;;  %v26_v16 = vld [vmem:[%s290_s1 + $0x50] sm:$0xff] }
   0x5   :  { %178 = vmatpush3.bf16.msra.mxu0 %v175_v3  ;;  %v191_v15 = vpack.c.bf16 %v25_v14, %v24_v13  ;;  %v27_v17 = vld [vmem:[%s290_s1 + $0x58] sm:$0xff]  ;;  %v28_v19 = vld [vmem:[%s290_s1 + $0x60] sm:$0xff]  ;;  %v29_v20 = vld [vmem:[%s290_s1 + $0x68] sm:$0xff] }
   0x6   :  { %180 = vmatprep.subr.bf16.mxu0 %v179_v5  ;;  %v195_v18 = vpack.c.bf16 %v27_v17, %v26_v16  ;;  %v199_v21 = vpack.c.bf16 %v29_v20, %v28_v19  ;;  %v30_v22 = vld [vmem:[%s290_s1 + $0x70] sm:$0xff]  ;;  %v31_v23 = vld [vmem:[%s290_s1 + $0x78] sm:$0xff]  ;;  %v15_v25 = vld [vmem:[%s291_s0 + $0x8] sm:$0xff] }
   0x7   :  { %v203_v24 = vpack.c.bf16 %v31_v23, %v30_v22  ;;  %v121_v26 = vld [vmem:[%s292_s2] ss:$0 sm:$0xff] }
   0x9   :  { %182 = vmatpush3.bf16.msra.mxu0 %v179_v5 }
   0xa   :  { %184 = vmatprep.subr.bf16.mxu0 %v183_v8 }
   0xd   :  { %186 = vmatpush3.bf16.msra.mxu0 %v183_v8 }
   0xe   :  { %188 = vmatprep.subr.bf16.mxu0 %v187_v12 }
  0x11   :  { %190 = vmatpush3.bf16.msra.mxu0 %v187_v12 }
  0x12   :  { %192 = vmatprep.subr.bf16.mxu0 %v191_v15 }
  0x15   :  { %194 = vmatpush3.bf16.msra.mxu0 %v191_v15 }
  0x16   :  { %196 = vmatprep.subr.bf16.mxu0 %v195_v18 }
  0x19   :  { %198 = vmatpush3.bf16.msra.mxu0 %v195_v18 }
  0x1a   :  { %200 = vmatprep.subr.bf16.mxu0 %v199_v21 }
  0x1d   :  { %202 = vmatpush3.bf16.msra.mxu0 %v199_v21 }
  0x1e   :  { %204 = vmatprep.subr.bf16.mxu0 %v203_v24 }
  0x21   :  { %206 = vmatpush3.bf16.msra.mxu0 %v203_v24 }
  0x24   :  { %173 = vmatmul.mubr.f32.vlgmr.msra.gmra.mrb[0].mxu0 %v15_v25 }
  0xf7   :  { %v174_v27 = vpop.f32.mrb[0].mxu0 }
  0xf8   :  { %v111_v28 = vadd.f32 %v174_v27, %v121_v26  ;;  %v105_v29 = vpop.f32.mrb[1].mxu0 }
  0xf9   :  { %v106_v30 = vadd.f32 %v121_v26, %v105_v29 }
  0xfa   :  { %116 = vst.msk [vmem:[%s293_s3 + $0x8] sm:$0xff] %vm114_vm0, %v111_v28 }
  0xfb   :  { %115 = vst.msk [vmem:[%s293_s3] sm:$0xff] %vm114_vm0, %v106_v30 }

// kernel: run.35
= control target key start
LH: loop header
LB: loop body
LE: loop exit
PB: predicated region body
PF: predicated region fallthrough
CT: control target
= control target key end

     0   :  { %vm24_vm0 = vcmask 261120   ;;  %s185_s0 = inlined_call_operand.vmem [shape: f32[16,32], index: 0, kind: input, shape index: {}]   ;;  %s186_s1 = inlined_call_operand.vmem [shape: f32[16,32], index: 1, kind: input, shape index: {}]   ;;  %s187_s2 = inlined_call_operand.vmem [shape: f32[1,32], index: 2, kind: input, shape index: {}]   ;;  %s188_s3 = inlined_call_operand.vmem [shape: f32[1,32], index: 3, kind: input, shape index: {}]   ;;  %s189_s4 = inlined_call_operand.hbm [shape: f32[16,32], index: 4, kind: output, shape index: {}]  }
   0x1   :  { %v18_v0 = vld [vmem:[%s185_s0] sm:$0xff]  ;;  %v19_v2 = vld [vmem:[%s185_s0 + $0x8] sm:$0xff] }
   0x2   :  { %v20_v1 = vld [vmem:[%s186_s1] sm:$0xff]  ;;  %v21_v4 = vld [vmem:[%s186_s1 + $0x8] sm:$0xff] }
   0x3   :  { %v22_v3 = vadd.f32 %v20_v1, %v18_v0 }
   0x4   :  { %9 = vsyncpa [#allocation3], 0  ;;  %v23_v5 = vadd.f32 %v21_v4, %v19_v2  ;;  %v88_v25 = vld [vmem:[%s187_s2] ss:$0 sm:$0xff]  ;;  %s121_s25 = smov [#allocation2]  }
   0x5   :  { %v25_v6 = vsel %vm24_vm0, %v22_v3, 0.0  ;;  %v89_v27 = vld [vmem:[%s188_s3] ss:$0 sm:$0xff]  ;;  %s77_s26 = sshll.u32 %s121_s25, 4  ;;  %s78_s26 = int_to_ptr.vmem [resolvable:$true] %s77_s26 }
   0x6   :  { %26 = vadd.xlane.f32.xlu0 %v25_v6  ;;  %v28_v7 = vsel %vm24_vm0, %v23_v5, 0.0  ;;  %s97_s27 = scalar_lea.vmem %s78_s26, 256  ;;  %p102_p1 = scmp.lt.s32.totalorder %s78_s26, %s78_s26 }
   0x7   :  { %p98_p0 = scmp.ne.s32.totalorder %s78_s26, %s97_s27  ;;  %p103_p2 = scmp.lt.s32.totalorder %s97_s27, %s97_s27 }
   0x9   :  { %p104_p3 = por %p103_p2, %p102_p1 }
   0xa   :  { %29 = vadd.xlane.f32.xlu0 %v28_v7 }
   0xb   :  { %p105_p4 = pnand %p104_p3, %p98_p0 }
  0x93   :  { %v27_v8 = vpop.xlane.xlu0 %26 }
  0x94   :  { %v32_v9 = vmul.f32 0.03125, %v27_v8 }
  0x96   :  { %v34_v10 = vsub.f32 %v22_v3, %v32_v9 }
  0x97   :  { %v30_v11 = vpop.xlane.xlu0 %29 }
  0x98   :  { %v33_v12 = vmul.f32 0.03125, %v30_v11  ;;  %v36_v13 = vmul.f32 %v34_v10, %v34_v10 }
  0x9a   :  { %v35_v14 = vsub.f32 %v23_v5, %v33_v12  ;;  %v38_v15 = vsel %vm24_vm0, %v36_v13, 0.0 }
  0x9b   :  { %39 = vadd.xlane.f32.xlu1 %v38_v15 }
  0x9c   :  { %v37_v16 = vmul.f32 %v35_v14, %v35_v14 }
  0x9e   :  { %v41_v17 = vsel %vm24_vm0, %v37_v16, 0.0 }
  0x9f   :  { %42 = vadd.xlane.f32.xlu1 %v41_v17 }
 0x128   :  { %v40_v18 = vpop.xlane.xlu1 %39 }
 0x129   :  { %v44_v19 = vmul.f32 0.03125, %v40_v18 }
 0x12b   :  { %v46_v20 = vadd.f32 1e-12, %v44_v19 }
 0x12c   :  { %v43_v21 = vpop.xlane.xlu1 %42 }
 0x12d   :  { %93 = vrsqrt.f32 %v46_v20  ;;  %v45_v22 = vmul.f32 0.03125, %v43_v21 }
 0x12f   :  { %v47_v23 = vadd.f32 1e-12, %v45_v22 }
 0x131   :  { %95 = vrsqrt.f32 %v47_v23 }
 0x137   :  { %v94_v24 = vpop.eup %93 }
 0x138   :  { %v50_v26 = vmul.f32 %v94_v24, %v34_v10 }
 0x13a   :  { %v59_v28 = vmul.f32 %v88_v25, %v50_v26 }
 0x13b   :  { %v96_v29 = vpop.eup %95 }
 0x13c   :  { %v51_v30 = vmul.f32 %v96_v29, %v35_v14  ;;  %v68_v31 = vadd.f32 %v89_v27, %v59_v28 }
 0x13e   :  { %v60_v32 = vmul.f32 %v88_v25, %v51_v30  ;;  %70 = vst.msk [vmem:[#allocation2] sm:$0xff] %vm24_vm0, %v68_v31 }
 0x140   :  { %v69_v33 = vadd.f32 %v89_v27, %v60_v32 }
 0x142   :  { %71 = vst.msk [vmem:[#allocation2 + $0x8] sm:$0xff] %vm24_vm0, %v69_v33 }
 0x143   :  { %108 = shalt.err (!%p105_p4)
}
 0x144   :  { %s109_s28 = scalar_lea.hbm %s189_s4, 256 }
 0x145   :  { %p110_p5 = scmp.ne.s32.totalorder %s189_s4, %s109_s28  ;;  %p113_p6 = scmp.lt.u32.totalorder %s109_s28, %s189_s4 }
 0x147   :  { %p115_p7 = pnand %p113_p6, %p110_p5 }
 0x149   :  { %118 = shalt.err (!%p115_p7)
}
 0x14a   :  { %s122_s7 = smov 128   ;;  %s123_s8 = smov 8  }
 0x14b   :  { %83 = dma.vmem_to_hbm [thread:$0]  %s78_s26, 256, %s189_s4, [#allocation3], %s122_s7, %s122_s7, %s123_s8  }
 0x14c   :  { %119 = dma.done.wait [#allocation3], 256  }
 0x14d   :  { %120 = vsyncadd [#allocation3], 4294967040 }
 0x14e   :  { %87 = vsyncpa [#allocation3], 1 }

</bundles_post_ra>
